<compile_context>
chip_gen: v7x
topology: tpu7x:2x2x1
jax: 0.10.0
libtpu: 0.0.40
codegen_flags: <defaults>
</compile_context>

<pallas_src>
import jax
import jax.numpy as jnp
import numpy as np
from jax.experimental import pallas as pl
from jax.experimental.pallas import tpu as pltpu

_EPS = 1e-12
_VMEM_BUDGET = 24 * 1024 * 1024   # conservative: well under v7x 64 MiB VMEM
_MAX_BATCH_PACK = 16              # cap on in-kernel unrolled per-image dots


def _round_up(v, m):
    return ((v + m - 1) // m) * m


def _round_down(v, m):
    return (v // m) * m


def _cosine_conv_kernel(x_ref, w_ref, o_ref):
    # x_ref: (b_t, K, t_hw) channels-first input tile (lane dim = spatial).
    # w_ref: (C_pad, K) pre-normalized weight with `scale` folded in.
    # o_ref: (b_t, C_pad, t_hw) output tile (lane-dense, C_pad % 8 == 0).
    w = w_ref[...]
    eps2 = jnp.float32(_EPS * _EPS)
    for b in range(x_ref.shape[0]):          # static, small -> fully unrolled
        x = x_ref[b]                                            # (K, t_hw)
        xf = x.astype(jnp.float32)
        # F.normalize(x, p=2, dim=1): per-pixel L2 norm over channels (axis 0).
        sumsq = jnp.sum(xf * xf, axis=0, keepdims=True)         # (1, t_hw)
        inv = jax.lax.rsqrt(jnp.maximum(sumsq, eps2))           # EUP slot
        # (C_pad, K) @ (K, t_hw) on the MXU with the *raw* x; the per-pixel
        # 1/||x|| is folded into the (C_pad, t_hw) output instead of scaling
        # the (K, t_hw) input (less VALU work when K >> C, no f32 copy of x).
        y = jnp.dot(w, x, preferred_element_type=jnp.float32) * inv
        o_ref[b] = y.astype(o_ref.dtype)


def _choose_tiles(n, k, c_pad, hw128):
    """Pick (b_t, t_hw) so dbl-buffered X/O blocks + resident W fit the budget."""
    w_bytes = c_pad * k * 4
    per_col = 2 * (k + c_pad) * 4            # dbl-buffered X + O (f32 worst case)
    avail = max(_VMEM_BUDGET - w_bytes, per_col * 128)
    max_cols = avail // per_col
    t_hw = max(min(_round_down(max_cols, 128), hw128), 128)
    b_t = 1
    if t_hw >= hw128:
        # One tile covers the whole image: pack several images per grid step so
        # the ~0.35 us/step overhead is amortized over more bytes moved.
        t_hw = hw128
        b_t = int(min(n, max(max_cols // t_hw, 1), _MAX_BATCH_PACK))
    return b_t, t_hw


@jax.jit
def cosine_conv(x_nchw, weight, scale):
    """Pallas implementation of CosineConv.forward.

    x_nchw : (N, K, H, W)
    weight : (C, K, 1, 1)   (num_classes, n_feat, 1, 1)
    scale  : scalar
    returns: (N, C, H, W) in x_nchw.dtype
    """
    n, k, h, w = x_nchw.shape
    c = weight.shape[0]
    hw = h * w

    # ---- wrapper-side prep: normalize W along K, fold in `scale`, pad C ----
    scale_f = jnp.asarray(scale, jnp.float32)
    w2d = weight.reshape(c, k).astype(jnp.float32)
    w_sumsq = jnp.sum(w2d * w2d, axis=1, keepdims=True)
    w_eff = w2d * (scale_f * jax.lax.rsqrt(
        jnp.maximum(w_sumsq, jnp.float32(_EPS * _EPS))))        # (C, K)
    c_pad = _round_up(c, 8)              # unmasked full-sublane output stores
    if c_pad != c:
        w_eff = jnp.pad(w_eff, ((0, c_pad - c), (0, 0)))        # zero rows
    # Feed the MXU in the activation dtype (bf16 activations stay bf16).
    compute_dtype = x_nchw.dtype if x_nchw.dtype == jnp.bfloat16 else jnp.float32
    w_eff = w_eff.astype(compute_dtype)

    # ---- shape-adaptive tiling (VMEM-budgeted), lane-dense spatial axis ----
    hw128 = _round_up(hw, 128)
    b_t, t_hw = _choose_tiles(n, k, c_pad, hw128)
    hw_pad = _round_up(hw, t_hw)
    n_pad = _round_up(n, b_t)

    x3d = x_nchw.reshape(n, k, hw)
    if (n_pad != n) or (hw_pad != hw):
        # Padded columns / images are all-zero -> dot == 0 -> output 0 (sliced).
        x3d = jnp.pad(x3d, ((0, n_pad - n), (0, 0), (0, hw_pad - hw)))

    grid = (n_pad // b_t, hw_pad // t_hw)

    # Explicit scoped-VMEM limit: 2x-buffered X/O blocks + single-buffered W.
    footprint = 2 * b_t * (k + c_pad) * t_hw * 4 + c_pad * k * 4
    vmem_limit = int(min(max(footprint + (4 << 20), 32 << 20), 48 << 20))

    out3d = pl.pallas_call(
        _cosine_conv_kernel,
        out_shape=jax.ShapeDtypeStruct((n_pad, c_pad, hw_pad), x_nchw.dtype),
        grid=grid,
        in_specs=[
            pl.BlockSpec((b_t, k, t_hw), lambda i, j: (i, 0, j)),      # X tile
            pl.BlockSpec((c_pad, k), lambda i, j: (0, 0),              # W resident,
                         pipeline_mode=pl.Buffered(1)),                # single buffer
        ],
        out_specs=pl.BlockSpec((b_t, c_pad, t_hw), lambda i, j: (i, 0, j)),
        compiler_params=pltpu.CompilerParams(
            dimension_semantics=("parallel", "parallel"),
            vmem_limit_bytes=vmem_limit),
    )(x3d, w_eff)

    return out3d[:n, :c, :hw].reshape(n, c, h, w)


def _reference(x_nchw, weight, scale):
    eps = 1e-12
    xn = x_nchw / jnp.maximum(
        jnp.sqrt(jnp.sum(x_nchw * x_nchw, axis=1, keepdims=True)), eps)
    wt = weight[:, :, 0, 0]
    wn = wt / jnp.maximum(
        jnp.sqrt(jnp.sum(wt * wt, axis=1, keepdims=True)), eps)
    return scale * jnp.einsum("nkhw,ck->nchw", xn, wn)


if __name__ == "__main__":
    key = jax.random.PRNGKey(0)
    k_x, k_w = jax.random.split(key)

    batch, n_feat, spatial, num_classes = 2, 4, 16, 8

    x = jax.random.normal(k_x, (batch, n_feat, spatial, spatial), jnp.float32)
    # weight ~ N(0, sqrt(2/num_classes)), shape (num_classes, n_feat, 1, 1)
    weight = jax.random.normal(
        k_w, (num_classes, n_feat, 1, 1), jnp.float32) * np.sqrt(
            2.0 / num_classes)
    scale = jnp.float32(10.0)

    out = jax.block_until_ready(cosine_conv(x, weight, scale))
    ref = jax.block_until_ready(_reference(x, weight, scale))

    assert out.shape == (batch, num_classes, spatial, spatial)
    np.testing.assert_allclose(np.asarray(out), np.asarray(ref),
                               rtol=1e-4, atol=1e-4)
    print("KERNEL_OK")
</pallas_src>

<mosaic_0001>
module attributes {stable_mosaic.version = 11 : i64} {
  func.func @_cosine_conv_kernel(%arg0: i32, %arg1: i32, %arg2: memref<2x4x256xf32, #tpu.memory_space<vmem>>, %arg3: memref<8x4xf32, #tpu.memory_space<vmem>>, %arg4: memref<2x8x256xf32, #tpu.memory_space<vmem>>) attributes {dimension_semantics = [#tpu.dimension_semantics<parallel>, #tpu.dimension_semantics<parallel>], iteration_bounds = array<i64: 1, 1>, scalar_prefetch = 0 : i64, scratch_operands = 0 : i64, tpu.core_type = #tpu.core_type<tc>, window_params = [{transform_indices = @transform_0, window_bounds = array<i64: 2, 4, 256>}, {pipeline_mode = #tpu.pipeline_mode<synchronous>, transform_indices = @transform_1, window_bounds = array<i64: 8, 4>}, {transform_indices = @transform_2, window_bounds = array<i64: 2, 8, 256>}]} {
    %c0 = arith.constant 0 : index
    %c0_0 = arith.constant 0 : index
    %0 = vector.load %arg3[%c0, %c0_0] : memref<8x4xf32, #tpu.memory_space<vmem>>, vector<8x4xf32>
    %c0_1 = arith.constant 0 : index
    %c0_2 = arith.constant 0 : index
    %c0_3 = arith.constant 0 : index
    %1 = vector.load %arg2[%c0_1, %c0_2, %c0_3] : memref<2x4x256xf32, #tpu.memory_space<vmem>>, vector<1x4x256xf32>
    %2 = vector.shape_cast %1 : vector<1x4x256xf32> to vector<4x256xf32>
    %3 = arith.mulf %2, %2 : vector<4x256xf32>
    %cst = arith.constant dense<0.000000e+00> : vector<256xf32>
    %4 = vector.multi_reduction <add>, %3, %cst [0] : vector<4x256xf32> to vector<256xf32>
    %5 = vector.shape_cast %4 : vector<256xf32> to vector<1x256xf32>
    %cst_4 = arith.constant 1.000000e-24 : f32
    %6 = vector.broadcast %cst_4 : f32 to vector<1x256xf32>
    %7 = arith.maximumf %5, %6 : vector<1x256xf32>
    %8 = math.rsqrt %7 : vector<1x256xf32>
    %cst_5 = arith.constant dense<0.000000e+00> : vector<8x256xf32>
    %9 = tpu.matmul %0, %2, %cst_5 {dimension_numbers = #tpu.dot_dimension_numbers<[1], [0], [0], [1], [0, 0, 1, 1], [], []>} : vector<8x4xf32>, vector<4x256xf32>, vector<8x256xf32> -> vector<8x256xf32>
    %10 = vector.broadcast %8 : vector<1x256xf32> to vector<8x256xf32>
    %11 = arith.mulf %9, %10 : vector<8x256xf32>
    %c0_6 = arith.constant 0 : index
    %c0_7 = arith.constant 0 : index
    %c0_8 = arith.constant 0 : index
    %12 = vector.load %arg4[%c0_6, %c0_7, %c0_8] : memref<2x8x256xf32, #tpu.memory_space<vmem>>, vector<1x8x256xf32>
    %13 = vector.shape_cast %12 : vector<1x8x256xf32> to vector<8x256xf32>
    %14 = vector.shape_cast %11 : vector<8x256xf32> to vector<1x8x256xf32>
    tpu.vector_store %arg4[%c0_6, %c0_7, %c0_8], %14 {strides = array<i32>} : memref<2x8x256xf32, #tpu.memory_space<vmem>>, vector<1x8x256xf32>,
    %c1 = arith.constant 1 : index
    %c0_9 = arith.constant 0 : index
    %c0_10 = arith.constant 0 : index
    %15 = vector.load %arg2[%c1, %c0_9, %c0_10] : memref<2x4x256xf32, #tpu.memory_space<vmem>>, vector<1x4x256xf32>
    %16 = vector.shape_cast %15 : vector<1x4x256xf32> to vector<4x256xf32>
    %17 = arith.mulf %16, %16 : vector<4x256xf32>
    %cst_11 = arith.constant dense<0.000000e+00> : vector<256xf32>
    %18 = vector.multi_reduction <add>, %17, %cst_11 [0] : vector<4x256xf32> to vector<256xf32>
    %19 = vector.shape_cast %18 : vector<256xf32> to vector<1x256xf32>
    %cst_12 = arith.constant 1.000000e-24 : f32
    %20 = vector.broadcast %cst_12 : f32 to vector<1x256xf32>
    %21 = arith.maximumf %19, %20 : vector<1x256xf32>
    %22 = math.rsqrt %21 : vector<1x256xf32>
    %cst_13 = arith.constant dense<0.000000e+00> : vector<8x256xf32>
    %23 = tpu.matmul %0, %16, %cst_13 {dimension_numbers = #tpu.dot_dimension_numbers<[1], [0], [0], [1], [0, 0, 1, 1], [], []>} : vector<8x4xf32>, vector<4x256xf32>, vector<8x256xf32> -> vector<8x256xf32>
    %24 = vector.broadcast %22 : vector<1x256xf32> to vector<8x256xf32>
    %25 = arith.mulf %23, %24 : vector<8x256xf32>
    %c1_14 = arith.constant 1 : index
    %c0_15 = arith.constant 0 : index
    %c0_16 = arith.constant 0 : index
    %26 = vector.load %arg4[%c1_14, %c0_15, %c0_16] : memref<2x8x256xf32, #tpu.memory_space<vmem>>, vector<1x8x256xf32>
    %27 = vector.shape_cast %26 : vector<1x8x256xf32> to vector<8x256xf32>
    %28 = vector.shape_cast %25 : vector<8x256xf32> to vector<1x8x256xf32>
    tpu.vector_store %arg4[%c1_14, %c0_15, %c0_16], %28 {strides = array<i32>} : memref<2x8x256xf32, #tpu.memory_space<vmem>>, vector<1x8x256xf32>,
    return
  }
  func.func @transform_0(%arg0: i32, %arg1: i32) -> (i32, i32, i32) {
    %c0_i32 = arith.constant 0 : i32
    %c0_i32_0 = arith.constant 0 : i32
    return %arg0, %c0_i32, %arg1 : i32, i32, i32
  }
  func.func @transform_1(%arg0: i32, %arg1: i32) -> (i32, i32) {
    %c0_i32 = arith.constant 0 : i32
    %c0_i32_0 = arith.constant 0 : i32
    %c0_i32_1 = arith.constant 0 : i32
    return %c0_i32, %c0_i32_0 : i32, i32
  }
  func.func @transform_2(%arg0: i32, %arg1: i32) -> (i32, i32, i32) {
    %c0_i32 = arith.constant 0 : i32
    %c0_i32_0 = arith.constant 0 : i32
    return %arg0, %c0_i32, %arg1 : i32, i32, i32
  }
}

</mosaic_0001>

<bundles_post_ra>
// kernel: cosine_conv.1
= control target key start
LH: loop header
LB: loop body
LE: loop exit
PB: predicated region body
PF: predicated region fallthrough
CT: control target
= control target key end

     0   :  { %vm17_vm0 = vcmask 1043456   ;;  %v251_v2 = vmov 0.0   ;;  %vm38_vm1 = vcmask 31744   ;;  %s296_s0 = inlined_call_operand.vmem [shape: f32[2,4,256], index: 0, kind: input, shape index: {}]   ;;  %s297_s1 = inlined_call_operand.vmem [shape: f32[8,4], index: 1, kind: input, shape index: {}]   ;;  %s298_s2 = inlined_call_operand.vmem [shape: f32[2,8,256], index: 2, kind: output, shape index: {}]  }
   0x1   :  { %v12_v0 = vld [vmem:[%s296_s0] sm:$0xff]  ;;  %v234_v1 = vld [vmem:[%s296_s0 + $0x8] sm:$0xff]  ;;  %110 = vmatprep.mubr.f32.mxu0 %v251_v2  ;;  %215 = vmatprep.mubr.f32.mxu1 %v251_v2 }
   0x2   :  { %v13_v3 = vmul.f32 %v12_v0, %v12_v0  ;;  %v37_v4 = vcombine.high %v12_v0, %v12_v0  ;;  %v123_v5 = vmul.f32 %v234_v1, %v234_v1  ;;  %v146_v6 = vcombine.high %v234_v1, %v234_v1  ;;  %v11_v7 = vld [vmem:[%s297_s1] sm:$0xff] }
   0x4   :  { %v15_v8 = vcombine.high %v13_v3, %v13_v3  ;;  %v18_v9 = vsel %vm17_vm0, %v13_v3, 0.0  ;;  %231 = vmatprep.subr.msk.mxu0 %vm17_vm0, %v37_v4  ;;  %v125_v10 = vcombine.high %v123_v5, %v123_v5  ;;  %v127_v11 = vsel %vm17_vm0, %v123_v5, 0.0  ;;  %235 = vmatprep.subr.msk.mxu1 %vm17_vm0, %v146_v6 }
   0x5   :  { %232 = vmatpush1.msk.msra.mxu0 %vm17_vm0, %v12_v0  ;;  %236 = vmatpush1.msk.msra.mxu1 %vm17_vm0, %v234_v1  ;;  %v19_v14 = vrot.slane %v18_v9, 4  ;;  %v128_v15 = vrot.slane %v127_v11, 4 }
   0x6   :  { %v25_v12 = vsel %vm17_vm0, %v15_v8, 0.0  ;;  %v134_v13 = vsel %vm17_vm0, %v125_v10, 0.0  ;;  %233 = vmatmul.mubr.msk.f32.vlgmr.msra.gmra.mrb[0].mxu0 %vm38_vm1, %v11_v7  ;;  %237 = vmatmul.mubr.msk.f32.vlgmr.msra.gmra.mrb[0].mxu1 %vm38_vm1, %v11_v7 }
   0x7   :  { %v26_v16 = vrot.slane %v25_v12, 4  ;;  %v135_v17 = vrot.slane %v134_v13, 4  ;;  %v20_v18 = vadd.f32 %v19_v14, %v18_v9  ;;  %v129_v19 = vadd.f32 %v128_v15, %v127_v11 }
   0x9   :  { %v27_v20 = vadd.f32 %v26_v16, %v25_v12  ;;  %v136_v21 = vadd.f32 %v135_v17, %v134_v13  ;;  %v21_v22 = vrot.slane %v20_v18, 2  ;;  %v130_v23 = vrot.slane %v129_v19, 2 }
   0xb   :  { %v28_v24 = vrot.slane %v27_v20, 2  ;;  %v137_v25 = vrot.slane %v136_v21, 2  ;;  %v22_v26 = vadd.f32 %v21_v22, %v20_v18  ;;  %v131_v27 = vadd.f32 %v130_v23, %v129_v19 }
   0xd   :  { %v29_v28 = vadd.f32 %v28_v24, %v27_v20  ;;  %v138_v29 = vadd.f32 %v137_v25, %v136_v21  ;;  %v23_v30 = vrot.slane %v22_v26, 1  ;;  %v132_v31 = vrot.slane %v131_v27, 1 }
   0xf   :  { %v30_v32 = vrot.slane %v29_v28, 1  ;;  %v139_v33 = vrot.slane %v138_v29, 1  ;;  %v24_v34 = vadd.f32 %v23_v30, %v22_v26  ;;  %v133_v35 = vadd.f32 %v132_v31, %v131_v27 }
  0x11   :  { %v31_v36 = vadd.f32 %v30_v32, %v29_v28  ;;  %v140_v37 = vadd.f32 %v139_v33, %v138_v29  ;;  %v32_v38 = vmax.f32 %v24_v34, 1e-24  ;;  %v141_v39 = vmax.f32 %v133_v35, 1e-24 }
  0x13   :  { %v33_v40 = vmax.f32 %v31_v36, 1e-24  ;;  %v142_v41 = vmax.f32 %v140_v37, 1e-24  ;;  %243 = vrsqrt.f32 %v32_v38 }
  0x14   :  { %245 = vrsqrt.f32 %v141_v39 }
  0x15   :  { %247 = vrsqrt.f32 %v33_v40 }
  0x16   :  { %249 = vrsqrt.f32 %v142_v41 }
  0x1d   :  { %v244_v42 = vpop.eup %243 }
  0x1e   :  { %v246_v43 = vpop.eup %245 }
  0x1f   :  { %v248_v44 = vpop.eup %247 }
  0x20   :  { %v250_v45 = vpop.eup %249 }
  0xd9   :  { %v112_v46 = vpop.f32.mrb[0].mxu0  ;;  %v217_v47 = vpop.f32.mrb[0].mxu1 }
  0xda   :  { %v117_v48 = vmul.f32 %v244_v42, %v112_v46  ;;  %v222_v49 = vmul.f32 %v246_v43, %v217_v47  ;;  %v114_v50 = vpop.f32.mrb[1].mxu0  ;;  %v219_v51 = vpop.f32.mrb[1].mxu1 }
  0xdb   :  { %v118_v52 = vmul.f32 %v248_v44, %v114_v50  ;;  %v223_v53 = vmul.f32 %v250_v45, %v219_v51 }
  0xdc   :  { %119 = vst [vmem:[%s298_s2] sm:$0xff] %v117_v48  ;;  %238 = vst [vmem:[%s298_s2 + $0x10] sm:$0xff] %v222_v49 }
  0xdd   :  { %120 = vst [vmem:[%s298_s2 + $0x8] sm:$0xff] %v118_v52  ;;  %239 = vst [vmem:[%s298_s2 + $0x18] sm:$0xff] %v223_v53 }

</bundles_post_ra>
